<compile_context>
chip_gen: v7x
topology: tpu7x:2x2x1
jax: 0.10.0
libtpu: 0.0.40
codegen_flags: <defaults>
</compile_context>

<pallas_src>
import jax
import jax.numpy as jnp
from jax.experimental import pallas as pl
from jax.experimental.pallas import tpu as pltpu


def _round_up(x, m):
    return ((x + m - 1) // m) * m


# ----------------- Phase 1: h_a = ReLU(x @ W1^T + b1) @ W2^T + b2 -----------------
def _mlp_kernel(x_ref, w1_ref, b1_ref, w2_ref, b2_ref, ha_ref):
    # TODO(synk): input dropout (p=0.2) is identity in eval mode, so it is skipped.
    x = x_ref[...]                                                     # [TM, n_in]
    h = jnp.dot(x, w1_ref[...], preferred_element_type=jnp.float32) + b1_ref[...]
    h = jnp.maximum(h, 0.0)
    ha = jnp.dot(h, w2_ref[...], preferred_element_type=jnp.float32) + b2_ref[...]
    ha_ref[...] = ha.astype(ha_ref.dtype)                              # [TM, h2_pad]


# ----------------- Phase 2: h_p = adj @ h_a (tiled over rows & contraction) -------
def _prop_kernel(adj_ref, ha_ref, hp_ref, acc_ref):
    k = pl.program_id(1)

    @pl.when(k == 0)
    def _():
        acc_ref[...] = jnp.zeros_like(acc_ref)

    acc_ref[...] += jnp.dot(adj_ref[...], ha_ref[...],
                            preferred_element_type=jnp.float32)

    @pl.when(k == pl.num_programs(1) - 1)
    def _():
        hp_ref[...] = acc_ref[...].astype(hp_ref.dtype)


def sugrl_forward(x, adj, w1, b1, w2, b2, *, adj_dtype=None):
    """x:[N,n_in], adj:[N,N] dense, w*:[out,in], b*:[out] (PyTorch Linear layout)."""
    N, n_in = x.shape
    h1 = w1.shape[0]
    h2 = w2.shape[0]
    f32 = jnp.float32

    # Lane-pad the narrow output feature dim so stores are unmasked / lane-dense.
    h2_pad = _round_up(h2, 128)

    # Row / contraction tile for the (HBM-bound) adjacency matmul.
    n128 = _round_up(N, 128)
    if n128 >= 2048:
        tile = 512          # 512x512 f32 adj tile = 1 MiB/buffer -> fits all chips
    elif n128 >= 256:
        tile = 256
    else:
        tile = 128
    N_pad = _round_up(N, tile)
    TM = tile
    TK = tile

    # ---- wrapper-side layout prep (pad / transpose once, outside the kernels) ----
    x_p = x.astype(f32)
    adj_p = adj.astype(adj_dtype) if adj_dtype is not None else adj.astype(f32)
    if N_pad != N:
        x_p = jnp.pad(x_p, ((0, N_pad - N), (0, 0)))
        adj_p = jnp.pad(adj_p, ((0, N_pad - N), (0, N_pad - N)))

    w1_t = w1.T.astype(f32)                                            # [n_in, h1]
    b1_r = b1.reshape(1, h1).astype(f32)
    w2_t = jnp.pad(w2.T.astype(f32), ((0, 0), (0, h2_pad - h2)))        # [h1, h2_pad]
    b2_r = jnp.pad(b2.reshape(1, h2).astype(f32), ((0, 0), (0, h2_pad - h2)))

    # --------------------------------- Phase 1: MLP --------------------------------
    mlp_cost = pl.CostEstimate(
        flops=2 * N_pad * n_in * h1 + 2 * N_pad * h1 * h2_pad,
        transcendentals=0,
        bytes_accessed=4 * (N_pad * n_in + n_in * h1 + h1 + h1 * h2_pad
                            + h2_pad + N_pad * h2_pad),
    )
    ha_pad = pl.pallas_call(
        _mlp_kernel,
        out_shape=jax.ShapeDtypeStruct((N_pad, h2_pad), f32),
        grid_spec=pltpu.PrefetchScalarGridSpec(
            num_scalar_prefetch=0,
            grid=(N_pad // TM,),
            in_specs=[
                pl.BlockSpec((TM, n_in), lambda i: (i, 0)),      # x row tile
                pl.BlockSpec((n_in, h1), lambda i: (0, 0)),      # W1^T  (resident)
                pl.BlockSpec((1, h1), lambda i: (0, 0)),         # b1    (resident)
                pl.BlockSpec((h1, h2_pad), lambda i: (0, 0)),    # W2^T  (resident)
                pl.BlockSpec((1, h2_pad), lambda i: (0, 0)),     # b2    (resident)
            ],
            out_specs=pl.BlockSpec((TM, h2_pad), lambda i: (i, 0)),
        ),
        compiler_params=pltpu.CompilerParams(
            dimension_semantics=("parallel",)),
        cost_estimate=mlp_cost,
    )(x_p, w1_t, b1_r, w2_t, b2_r)

    # ----------------------------- Phase 2: propagation ----------------------------
    ha_in = ha_pad if adj_p.dtype == f32 else ha_pad.astype(adj_p.dtype)
    adj_item = jnp.dtype(adj_p.dtype).itemsize
    ha_item = jnp.dtype(ha_in.dtype).itemsize
    prop_cost = pl.CostEstimate(
        flops=2 * N_pad * N_pad * h2_pad,
        transcendentals=0,
        bytes_accessed=(N_pad * N_pad * adj_item
                        + N_pad * h2_pad * ha_item
                        + N_pad * h2_pad * 4),
    )
    hp_pad = pl.pallas_call(
        _prop_kernel,
        out_shape=jax.ShapeDtypeStruct((N_pad, h2_pad), f32),
        grid_spec=pltpu.PrefetchScalarGridSpec(
            num_scalar_prefetch=0,
            grid=(N_pad // TM, N_pad // TK),                     # reduction axis last
            in_specs=[
                pl.BlockSpec((TM, TK), lambda i, k: (i, k)),     # adj tile stream
                pl.BlockSpec((TK, h2_pad), lambda i, k: (k, 0)), # h_a contraction tile
            ],
            out_specs=pl.BlockSpec((TM, h2_pad), lambda i, k: (i, 0)),
            scratch_shapes=[pltpu.VMEM((TM, h2_pad), jnp.float32)],
        ),
        compiler_params=pltpu.CompilerParams(
            dimension_semantics=("parallel", "arbitrary")),
        cost_estimate=prop_cost,
    )(adj_p, ha_in)

    # Slice padding back off.
    h_a = ha_pad[:N, :h2]
    h_p = hp_pad[:N, :h2]
    return h_a, h_p


def xavier_uniform(key, out_dim, in_dim):
    limit = jnp.sqrt(6.0 / (in_dim + out_dim))
    return jax.random.uniform(key, (out_dim, in_dim),
                              minval=-limit, maxval=limit, dtype=jnp.float32)


if __name__ == "__main__":
    # Small, TPU-friendly shapes: N=256 nodes, n_in=64, cfg=[64, 32]
    N, n_in = 256, 64
    cfg = [64, 32]

    key = jax.random.PRNGKey(0)
    k_x, k_adj, k_w1, k_w2 = jax.random.split(key, 4)

    x = jax.random.normal(k_x, (N, n_in), dtype=jnp.float32)

    # Dense (row-normalized) adjacency standing in for the sparse adj.
    adj_logits = jax.random.uniform(k_adj, (N, N), dtype=jnp.float32)
    adj_mask = (adj_logits > 0.9).astype(jnp.float32) + jnp.eye(N, dtype=jnp.float32)
    adj = adj_mask / jnp.maximum(adj_mask.sum(axis=1, keepdims=True), 1.0)

    # MLP parameters (PyTorch Linear convention: W [out, in], b [out]).
    w1 = xavier_uniform(k_w1, cfg[0], n_in)
    b1 = jnp.zeros((cfg[0],), dtype=jnp.float32)
    w2 = xavier_uniform(k_w2, cfg[1], cfg[0])
    b2 = jnp.zeros((cfg[1],), dtype=jnp.float32)

    h_a, h_p = jax.jit(sugrl_forward)(x, adj, w1, b1, w2, b2)
    jax.block_until_ready((h_a, h_p))

    # Pure-JAX reference check.
    h_ref = jnp.maximum(x @ w1.T + b1, 0.0) @ w2.T + b2
    hp_ref = adj @ h_ref
    assert jnp.allclose(h_a, h_ref, atol=1e-4, rtol=1e-4)
    assert jnp.allclose(h_p, hp_ref, atol=1e-4, rtol=1e-4)

    print("KERNEL_OK")
</pallas_src>

<mosaic_0001>
module attributes {stable_mosaic.version = 11 : i64} {
  func.func @_mlp_kernel(%arg0: i32, %arg1: memref<256x64xf32, #tpu.memory_space<vmem>>, %arg2: memref<64x64xf32, #tpu.memory_space<vmem>>, %arg3: memref<1x64xf32, #tpu.memory_space<vmem>>, %arg4: memref<64x128xf32, #tpu.memory_space<vmem>>, %arg5: memref<1x128xf32, #tpu.memory_space<vmem>>, %arg6: memref<256x128xf32, #tpu.memory_space<vmem>>) attributes {dimension_semantics = [#tpu.dimension_semantics<parallel>], iteration_bounds = array<i64: 1>, scalar_prefetch = 0 : i64, scratch_operands = 0 : i64, tpu.core_type = #tpu.core_type<tc>, window_params = [{transform_indices = @transform_0, window_bounds = array<i64: 256, 64>}, {pipeline_mode = #tpu.pipeline_mode<synchronous>, transform_indices = @transform_1, window_bounds = array<i64: 64, 64>}, {pipeline_mode = #tpu.pipeline_mode<synchronous>, transform_indices = @transform_2, window_bounds = array<i64: 1, 64>}, {pipeline_mode = #tpu.pipeline_mode<synchronous>, transform_indices = @transform_3, window_bounds = array<i64: 64, 128>}, {pipeline_mode = #tpu.pipeline_mode<synchronous>, transform_indices = @transform_4, window_bounds = array<i64: 1, 128>}, {transform_indices = @transform_5, window_bounds = array<i64: 256, 128>}]} {
    %c0 = arith.constant 0 : index
    %c0_0 = arith.constant 0 : index
    %0 = vector.load %arg1[%c0, %c0_0] : memref<256x64xf32, #tpu.memory_space<vmem>>, vector<256x64xf32>
    %c0_1 = arith.constant 0 : index
    %c0_2 = arith.constant 0 : index
    %1 = vector.load %arg2[%c0_1, %c0_2] : memref<64x64xf32, #tpu.memory_space<vmem>>, vector<64x64xf32>
    %cst = arith.constant dense<0.000000e+00> : vector<256x64xf32>
    %2 = tpu.matmul %0, %1, %cst {dimension_numbers = #tpu.dot_dimension_numbers<[1], [0], [0], [1], [0, 0, 1, 1], [], []>} : vector<256x64xf32>, vector<64x64xf32>, vector<256x64xf32> -> vector<256x64xf32>
    %c0_3 = arith.constant 0 : index
    %c0_4 = arith.constant 0 : index
    %3 = vector.load %arg3[%c0_3, %c0_4] : memref<1x64xf32, #tpu.memory_space<vmem>>, vector<1x64xf32>
    %4 = vector.broadcast %3 : vector<1x64xf32> to vector<256x64xf32>
    %5 = arith.addf %2, %4 : vector<256x64xf32>
    %cst_5 = arith.constant 0.000000e+00 : f32
    %6 = vector.broadcast %cst_5 : f32 to vector<256x64xf32>
    %7 = arith.maximumf %5, %6 : vector<256x64xf32>
    %c0_6 = arith.constant 0 : index
    %c0_7 = arith.constant 0 : index
    %8 = vector.load %arg4[%c0_6, %c0_7] : memref<64x128xf32, #tpu.memory_space<vmem>>, vector<64x128xf32>
    %cst_8 = arith.constant dense<0.000000e+00> : vector<256x128xf32>
    %9 = tpu.matmul %7, %8, %cst_8 {dimension_numbers = #tpu.dot_dimension_numbers<[1], [0], [0], [1], [0, 0, 1, 1], [], []>} : vector<256x64xf32>, vector<64x128xf32>, vector<256x128xf32> -> vector<256x128xf32>
    %c0_9 = arith.constant 0 : index
    %c0_10 = arith.constant 0 : index
    %10 = vector.load %arg5[%c0_9, %c0_10] : memref<1x128xf32, #tpu.memory_space<vmem>>, vector<1x128xf32>
    %11 = vector.broadcast %10 : vector<1x128xf32> to vector<256x128xf32>
    %12 = arith.addf %9, %11 : vector<256x128xf32>
    %c0_11 = arith.constant 0 : index
    %c0_12 = arith.constant 0 : index
    %13 = vector.load %arg6[%c0_11, %c0_12] : memref<256x128xf32, #tpu.memory_space<vmem>>, vector<256x128xf32>
    tpu.vector_store %arg6[%c0_11, %c0_12], %12 {strides = array<i32>} : memref<256x128xf32, #tpu.memory_space<vmem>>, vector<256x128xf32>,
    return
  }
  func.func @transform_0(%arg0: i32) -> (i32, i32) {
    %c0_i32 = arith.constant 0 : i32
    %c0_i32_0 = arith.constant 0 : i32
    return %arg0, %c0_i32 : i32, i32
  }
  func.func @transform_1(%arg0: i32) -> (i32, i32) {
    %c0_i32 = arith.constant 0 : i32
    %c0_i32_0 = arith.constant 0 : i32
    %c0_i32_1 = arith.constant 0 : i32
    return %c0_i32, %c0_i32_0 : i32, i32
  }
  func.func @transform_2(%arg0: i32) -> (i32, i32) {
    %c0_i32 = arith.constant 0 : i32
    %c0_i32_0 = arith.constant 0 : i32
    %c0_i32_1 = arith.constant 0 : i32
    return %c0_i32, %c0_i32_0 : i32, i32
  }
  func.func @transform_3(%arg0: i32) -> (i32, i32) {
    %c0_i32 = arith.constant 0 : i32
    %c0_i32_0 = arith.constant 0 : i32
    %c0_i32_1 = arith.constant 0 : i32
    return %c0_i32, %c0_i32_0 : i32, i32
  }
  func.func @transform_4(%arg0: i32) -> (i32, i32) {
    %c0_i32 = arith.constant 0 : i32
    %c0_i32_0 = arith.constant 0 : i32
    %c0_i32_1 = arith.constant 0 : i32
    return %c0_i32, %c0_i32_0 : i32, i32
  }
  func.func @transform_5(%arg0: i32) -> (i32, i32) {
    %c0_i32 = arith.constant 0 : i32
    %c0_i32_0 = arith.constant 0 : i32
    return %arg0, %c0_i32 : i32, i32
  }
}

module attributes {stable_mosaic.version = 11 : i64} {
  func.func @_prop_kernel(%arg0: i32, %arg1: i32, %arg2: memref<256x256xf32, #tpu.memory_space<vmem>>, %arg3: memref<256x128xf32, #tpu.memory_space<vmem>>, %arg4: memref<256x128xf32, #tpu.memory_space<vmem>>, %arg5: memref<256x128xf32, #tpu.memory_space<vmem>>) attributes {dimension_semantics = [#tpu.dimension_semantics<parallel>, #tpu.dimension_semantics<arbitrary>], iteration_bounds = array<i64: 1, 1>, scalar_prefetch = 0 : i64, scratch_operands = 1 : i64, tpu.core_type = #tpu.core_type<tc>, window_params = [{transform_indices = @transform_0, window_bounds = array<i64: 256, 256>}, {transform_indices = @transform_1, window_bounds = array<i64: 256, 128>}, {transform_indices = @transform_2, window_bounds = array<i64: 256, 128>}]} {
    %c0_i32 = arith.constant 0 : i32
    %0 = arith.cmpi eq, %arg1, %c0_i32 : i32
    %1 = arith.extui %0 : i1 to i32
    %c0_i32_0 = arith.constant 0 : i32
    %2 = arith.cmpi ne, %1, %c0_i32_0 : i32
    scf.if %2 {
      %cst_10 = arith.constant 0.000000e+00 : f32
      %12 = vector.broadcast %cst_10 : f32 to vector<256x128xf32>
      %c0_11 = arith.constant 0 : index
      %c0_12 = arith.constant 0 : index
      %13 = vector.load %arg5[%c0_11, %c0_12] : memref<256x128xf32, #tpu.memory_space<vmem>>, vector<256x128xf32>
      tpu.vector_store %arg5[%c0_11, %c0_12], %12 {strides = array<i32>} : memref<256x128xf32, #tpu.memory_space<vmem>>, vector<256x128xf32>,
    } else {
    }
    %c0 = arith.constant 0 : index
    %c0_1 = arith.constant 0 : index
    %3 = vector.load %arg5[%c0, %c0_1] : memref<256x128xf32, #tpu.memory_space<vmem>>, vector<256x128xf32>
    %c0_2 = arith.constant 0 : index
    %c0_3 = arith.constant 0 : index
    %4 = vector.load %arg2[%c0_2, %c0_3] : memref<256x256xf32, #tpu.memory_space<vmem>>, vector<256x256xf32>
    %c0_4 = arith.constant 0 : index
    %c0_5 = arith.constant 0 : index
    %5 = vector.load %arg3[%c0_4, %c0_5] : memref<256x128xf32, #tpu.memory_space<vmem>>, vector<256x128xf32>
    %cst = arith.constant dense<0.000000e+00> : vector<256x128xf32>
    %6 = tpu.matmul %4, %5, %cst {dimension_numbers = #tpu.dot_dimension_numbers<[1], [0], [0], [1], [0, 0, 1, 1], [], []>} : vector<256x256xf32>, vector<256x128xf32>, vector<256x128xf32> -> vector<256x128xf32>
    %7 = arith.addf %3, %6 : vector<256x128xf32>
    %c0_6 = arith.constant 0 : index
    %c0_7 = arith.constant 0 : index
    %8 = vector.load %arg5[%c0_6, %c0_7] : memref<256x128xf32, #tpu.memory_space<vmem>>, vector<256x128xf32>
    tpu.vector_store %arg5[%c0_6, %c0_7], %7 {strides = array<i32>} : memref<256x128xf32, #tpu.memory_space<vmem>>, vector<256x128xf32>,
    %c0_i32_8 = arith.constant 0 : i32
    %9 = arith.cmpi eq, %arg1, %c0_i32_8 : i32
    %10 = arith.extui %9 : i1 to i32
    %c0_i32_9 = arith.constant 0 : i32
    %11 = arith.cmpi ne, %10, %c0_i32_9 : i32
    scf.if %11 {
      %c0_10 = arith.constant 0 : index
      %c0_11 = arith.constant 0 : index
      %12 = vector.load %arg5[%c0_10, %c0_11] : memref<256x128xf32, #tpu.memory_space<vmem>>, vector<256x128xf32>
      %c0_12 = arith.constant 0 : index
      %c0_13 = arith.constant 0 : index
      %13 = vector.load %arg4[%c0_12, %c0_13] : memref<256x128xf32, #tpu.memory_space<vmem>>, vector<256x128xf32>
      tpu.vector_store %arg4[%c0_12, %c0_13], %12 {strides = array<i32>} : memref<256x128xf32, #tpu.memory_space<vmem>>, vector<256x128xf32>,
    } else {
    }
    return
  }
  func.func @transform_0(%arg0: i32, %arg1: i32) -> (i32, i32) {
    %c0_i32 = arith.constant 0 : i32
    return %arg0, %arg1 : i32, i32
  }
  func.func @transform_1(%arg0: i32, %arg1: i32) -> (i32, i32) {
    %c0_i32 = arith.constant 0 : i32
    %c0_i32_0 = arith.constant 0 : i32
    return %arg1, %c0_i32 : i32, i32
  }
  func.func @transform_2(%arg0: i32, %arg1: i32) -> (i32, i32) {
    %c0_i32 = arith.constant 0 : i32
    %c0_i32_0 = arith.constant 0 : i32
    return %arg0, %c0_i32 : i32, i32
  }
}

</mosaic_0001>

<bundles_post_ra>
// kernel: sugrl_forward.2
= control target key start
LH: loop header
LB: loop body
LE: loop exit
PB: predicated region body
PF: predicated region fallthrough
CT: control target
= control target key end

     0   :  { %vm67_vm0 = vcmask 523264   ;;  %s1507_s1 = inlined_call_operand.vmem [shape: f32[64,64], index: 1, kind: input, shape index: {}]   ;;  %s1508_s0 = inlined_call_operand.vmem [shape: f32[256,64], index: 0, kind: input, shape index: {}]   ;;  %s1509_s3 = inlined_call_operand.vmem [shape: f32[64,128], index: 3, kind: input, shape index: {}]   ;;  %s1510_s2 = inlined_call_operand.vmem [shape: f32[1,64], index: 2, kind: input, shape index: {}]   ;;  %s1511_s4 = inlined_call_operand.vmem [shape: f32[1,128], index: 4, kind: input, shape index: {}]   ;;  %s1512_s5 = inlined_call_operand.vmem [shape: f32[256,128], index: 5, kind: output, shape index: {}]  }
   0x1   :  { %v52_v0 = vld [vmem:[%s1507_s1] sm:$0xff]  ;;  %v53_v1 = vld [vmem:[%s1507_s1 + $0x8] sm:$0xff]  ;;  %v54_v2 = vld [vmem:[%s1507_s1 + $0x10] sm:$0xff] }
   0x2   :  { %v1067_v3 = vpack.c.bf16 %v53_v1, %v52_v0  ;;  %v55_v4 = vld [vmem:[%s1507_s1 + $0x18] sm:$0xff]  ;;  %v56_v6 = vld [vmem:[%s1507_s1 + $0x20] sm:$0xff]  ;;  %v57_v7 = vld [vmem:[%s1507_s1 + $0x28] sm:$0xff] }
   0x3   :  { %v1071_v5 = vpack.c.bf16 %v55_v4, %v54_v2  ;;  %v20_v8 = vld [vmem:[%s1508_s0] sm:$0xff]  ;;  %v1075_v9 = vpack.c.bf16 %v57_v7, %v56_v6  ;;  %v58_v10 = vld [vmem:[%s1507_s1 + $0x30] sm:$0xff]  ;;  %v59_v11 = vld [vmem:[%s1507_s1 + $0x38] sm:$0xff] }
   0x4   :  { %1068 = vmatprep.subr.bf16.mxu0 %v1067_v3  ;;  %955 = vmatprep.mubr.msk.f32.mxu0 %vm67_vm0, %v20_v8  ;;  %v1079_v12 = vpack.c.bf16 %v59_v11, %v58_v10  ;;  %v421_v13 = vld [vmem:[%s1509_s3] sm:$0xff]  ;;  %v422_v14 = vld [vmem:[%s1509_s3 + $0x8] sm:$0xff]  ;;  %v423_v16 = vld [vmem:[%s1509_s3 + $0x10] sm:$0xff] }
   0x5   :  { %1070 = vmatpush3.bf16.msra.mxu0 %v1067_v3  ;;  %v1083_v15 = vpack.c.bf16 %v422_v14, %v421_v13  ;;  %v424_v17 = vld [vmem:[%s1509_s3 + $0x18] sm:$0xff]  ;;  %v425_v19 = vld [vmem:[%s1509_s3 + $0x20] sm:$0xff]  ;;  %v426_v20 = vld [vmem:[%s1509_s3 + $0x28] sm:$0xff] }
   0x6   :  { %1072 = vmatprep.subr.bf16.mxu0 %v1071_v5  ;;  %v1087_v18 = vpack.c.bf16 %v424_v17, %v423_v16  ;;  %v21_v21 = vld [vmem:[%s1508_s0 + $0x8] sm:$0xff]  ;;  %v22_v22 = vld [vmem:[%s1508_s0 + $0x10] sm:$0xff]  ;;  %v1091_v23 = vpack.c.bf16 %v426_v20, %v425_v19  ;;  %v23_v24 = vld [vmem:[%s1508_s0 + $0x18] sm:$0xff] }
   0x7   :  { %1084 = vmatprep.subr.bf16.mxu1 %v1083_v15  ;;  %v24_v25 = vld [vmem:[%s1508_s0 + $0x20] sm:$0xff]  ;;  %v25_v26 = vld [vmem:[%s1508_s0 + $0x28] sm:$0xff]  ;;  %v26_v27 = vld [vmem:[%s1508_s0 + $0x30] sm:$0xff] }
   0x8   :  { %1086 = vmatpush3.bf16.msra.mxu1 %v1083_v15  ;;  %v27_v28 = vld [vmem:[%s1508_s0 + $0x38] sm:$0xff]  ;;  %v28_v29 = vld [vmem:[%s1508_s0 + $0x40] sm:$0xff]  ;;  %v29_v30 = vld [vmem:[%s1508_s0 + $0x48] sm:$0xff] }
   0x9   :  { %1074 = vmatpush3.bf16.msra.mxu0 %v1071_v5  ;;  %1088 = vmatprep.subr.bf16.mxu1 %v1087_v18  ;;  %v30_v31 = vld [vmem:[%s1508_s0 + $0x50] sm:$0xff]  ;;  %v31_v32 = vld [vmem:[%s1508_s0 + $0x58] sm:$0xff]  ;;  %v32_v33 = vld [vmem:[%s1508_s0 + $0x60] sm:$0xff] }
   0xa   :  { %1076 = vmatprep.subr.bf16.mxu0 %v1075_v9  ;;  %v33_v34 = vld [vmem:[%s1508_s0 + $0x68] sm:$0xff]  ;;  %v34_v35 = vld [vmem:[%s1508_s0 + $0x70] sm:$0xff]  ;;  %v35_v36 = vld [vmem:[%s1508_s0 + $0x78] sm:$0xff] }
   0xb   :  { %v36_v37 = vld [vmem:[%s1508_s0 + $0x80] sm:$0xff]  ;;  %v37_v38 = vld [vmem:[%s1508_s0 + $0x88] sm:$0xff]  ;;  %v38_v39 = vld [vmem:[%s1508_s0 + $0x90] sm:$0xff] }
   0xc   :  { %1090 = vmatpush3.bf16.msra.mxu1 %v1087_v18  ;;  %v39_v40 = vld [vmem:[%s1508_s0 + $0x98] sm:$0xff]  ;;  %v40_v41 = vld [vmem:[%s1508_s0 + $0xa0] sm:$0xff]  ;;  %v41_v42 = vld [vmem:[%s1508_s0 + $0xa8] sm:$0xff] }
   0xd   :  { %1078 = vmatpush3.bf16.msra.mxu0 %v1075_v9  ;;  %1092 = vmatprep.subr.bf16.mxu1 %v1091_v23  ;;  %v42_v43 = vld [vmem:[%s1508_s0 + $0xb0] sm:$0xff]  ;;  %v43_v44 = vld [vmem:[%s1508_s0 + $0xb8] sm:$0xff]  ;;  %v44_v45 = vld [vmem:[%s1508_s0 + $0xc0] sm:$0xff] }
   0xe   :  { %1080 = vmatprep.subr.bf16.mxu0 %v1079_v12  ;;  %v45_v46 = vld [vmem:[%s1508_s0 + $0xc8] sm:$0xff]  ;;  %v46_v47 = vld [vmem:[%s1508_s0 + $0xd0] sm:$0xff]  ;;  %v47_v48 = vld [vmem:[%s1508_s0 + $0xd8] sm:$0xff] }
   0xf   :  { %v48_v49 = vld [vmem:[%s1508_s0 + $0xe0] sm:$0xff]  ;;  %v49_v50 = vld [vmem:[%s1508_s0 + $0xe8] sm:$0xff]  ;;  %v50_v51 = vld [vmem:[%s1508_s0 + $0xf0] sm:$0xff] }
  0x10   :  { %1094 = vmatpush3.bf16.msra.mxu1 %v1091_v23  ;;  %v51_v52 = vld [vmem:[%s1508_s0 + $0xf8] sm:$0xff]  ;;  %v427_v53 = vld [vmem:[%s1509_s3 + $0x30] sm:$0xff]  ;;  %v1308_v56 = vld [vmem:[%s1510_s2] ss:$0 sm:$0xff] }
  0x11   :  { %1082 = vmatpush3.bf16.msra.mxu0 %v1079_v12  ;;  %v428_v54 = vld [vmem:[%s1509_s3 + $0x38] sm:$0xff] }
  0x12   :  { %v1095_v55 = vpack.c.bf16 %v428_v54, %v427_v53 }
  0x14   :  { %956 = vmatmul.mubr.msk.f32.vlgmr.msra.gmra.mrb[0].mxu0 %vm67_vm0, %v21_v21  ;;  %1096 = vmatprep.subr.bf16.mxu1 %v1095_v55 }
  0x15   :  { %958 = vmatprep.mubr.msk.f32.mxu0 %vm67_vm0, %v22_v22  ;;  %1098 = vmatpush3.bf16.msra.mxu1 %v1095_v55 }
  0x18   :  { %959 = vmatmul.mubr.msk.f32.gmra.mrb[2].mxu0 %vm67_vm0, %v23_v24 }
  0x19   :  { %961 = vmatprep.mubr.msk.f32.mxu0 %vm67_vm0, %v24_v25 }
  0x1c   :  { %962 = vmatmul.mubr.msk.f32.gmra.mrb[4].mxu0 %vm67_vm0, %v25_v26 }
  0x1d   :  { %964 = vmatprep.mubr.msk.f32.mxu0 %vm67_vm0, %v26_v27 }
  0x20   :  { %965 = vmatmul.mubr.msk.f32.gmra.mrb[6].mxu0 %vm67_vm0, %v27_v28 }
  0x21   :  { %967 = vmatprep.mubr.msk.f32.mxu0 %vm67_vm0, %v28_v29 }
  0x24   :  { %968 = vmatmul.mubr.msk.f32.gmra.mrb[8].mxu0 %vm67_vm0, %v29_v30 }
  0x25   :  { %970 = vmatprep.mubr.msk.f32.mxu0 %vm67_vm0, %v30_v31 }
  0x28   :  { %971 = vmatmul.mubr.msk.f32.gmra.mrb[10].mxu0 %vm67_vm0, %v31_v32 }
  0x29   :  { %973 = vmatprep.mubr.msk.f32.mxu0 %vm67_vm0, %v32_v33 }
  0x2c   :  { %974 = vmatmul.mubr.msk.f32.gmra.mrb[12].mxu0 %vm67_vm0, %v33_v34 }
  0x2d   :  { %976 = vmatprep.mubr.msk.f32.mxu0 %vm67_vm0, %v34_v35 }
  0x30   :  { %977 = vmatmul.mubr.msk.f32.gmra.mrb[14].mxu0 %vm67_vm0, %v35_v36 }
  0x31   :  { %979 = vmatprep.mubr.msk.f32.mxu0 %vm67_vm0, %v36_v37 }
  0x34   :  { %980 = vmatmul.mubr.msk.f32.gmra.mrb[16].mxu0 %vm67_vm0, %v37_v38 }
  0x35   :  { %982 = vmatprep.mubr.msk.f32.mxu0 %vm67_vm0, %v38_v39 }
  0x38   :  { %983 = vmatmul.mubr.msk.f32.gmra.mrb[18].mxu0 %vm67_vm0, %v39_v40 }
  0x39   :  { %985 = vmatprep.mubr.msk.f32.mxu0 %vm67_vm0, %v40_v41 }
  0x3c   :  { %986 = vmatmul.mubr.msk.f32.gmra.mrb[20].mxu0 %vm67_vm0, %v41_v42 }
  0x3d   :  { %988 = vmatprep.mubr.msk.f32.mxu0 %vm67_vm0, %v42_v43 }
  0x40   :  { %989 = vmatmul.mubr.msk.f32.gmra.mrb[22].mxu0 %vm67_vm0, %v43_v44 }
  0x41   :  { %991 = vmatprep.mubr.msk.f32.mxu0 %vm67_vm0, %v44_v45 }
  0x44   :  { %992 = vmatmul.mubr.msk.f32.gmra.mrb[24].mxu0 %vm67_vm0, %v45_v46 }
  0x45   :  { %994 = vmatprep.mubr.msk.f32.mxu0 %vm67_vm0, %v46_v47 }
  0x48   :  { %995 = vmatmul.mubr.msk.f32.gmra.mrb[26].mxu0 %vm67_vm0, %v47_v48 }
  0x49   :  { %997 = vmatprep.mubr.msk.f32.mxu0 %vm67_vm0, %v48_v49 }
  0x4c   :  { %998 = vmatmul.mubr.msk.f32.gmra.mrb[28].mxu0 %vm67_vm0, %v49_v50 }
  0x4d   :  { %1000 = vmatprep.mubr.msk.f32.mxu0 %vm67_vm0, %v50_v51 }
  0x50   :  { %1001 = vmatmul.mubr.msk.f32.gmra.mrb[30].mxu0 %vm67_vm0, %v51_v52 }
  0xe7   :  { %v957_v57 = vpop.f32.mrb[0].mxu0 }
  0xe8   :  { %v236_v58 = vadd.f32 %v957_v57, %v1308_v56  ;;  %v230_v59 = vpop.f32.mrb[1].mxu0 }
  0xe9   :  { %v231_v60 = vadd.f32 %v1308_v56, %v230_v59 }
  0xea   :  { %v390_v63 = vmax.f32 %v236_v58, 0.0 }
  0xeb   :  { %v389_v61 = vmax.f32 %v231_v60, 0.0  ;;  %v960_v62 = vpop.f32.mrb[2].mxu0 }
  0xec   :  { %v246_v0 = vadd.f32 %v960_v62, %v1308_v56  ;;  %v240_v1 = vpop.f32.mrb[3].mxu0 }
  0xed   :  { %v241_v2 = vadd.f32 %v1308_v56, %v240_v1  ;;  %1019 = vmatprep.mubr.msk.f32.mxu1 %vm67_vm0, %v389_v61 }
  0xee   :  { %1020 = vmatmul.mubr.msk.f32.vlgmr.msra.gmra.mrb[0].mxu1 %vm67_vm0, %v390_v63  ;;  %v392_v5 = vmax.f32 %v246_v0, 0.0 }
  0xef   :  { %v391_v3 = vmax.f32 %v241_v2, 0.0  ;;  %v963_v4 = vpop.f32.mrb[4].mxu0 }
  0xf0   :  { %v256_v6 = vadd.f32 %v963_v4, %v1308_v56  ;;  %v250_v7 = vpop.f32.mrb[5].mxu0 }
  0xf1   :  { %v251_v8 = vadd.f32 %v1308_v56, %v250_v7  ;;  %1022 = vmatprep.mubr.msk.f32.mxu1 %vm67_vm0, %v391_v3 }
  0xf2   :  { %1023 = vmatmul.mubr.msk.f32.gmra.mrb[2].mxu1 %vm67_vm0, %v392_v5  ;;  %v394_v11 = vmax.f32 %v256_v6, 0.0 }
  0xf3   :  { %v393_v9 = vmax.f32 %v251_v8, 0.0  ;;  %v966_v10 = vpop.f32.mrb[6].mxu0 }
  0xf4   :  { %v266_v12 = vadd.f32 %v966_v10, %v1308_v56  ;;  %v260_v13 = vpop.f32.mrb[7].mxu0 }
  0xf5   :  { %v261_v14 = vadd.f32 %v1308_v56, %v260_v13  ;;  %1025 = vmatprep.mubr.msk.f32.mxu1 %vm67_vm0, %v393_v9 }
  0xf6   :  { %1026 = vmatmul.mubr.msk.f32.gmra.mrb[4].mxu1 %vm67_vm0, %v394_v11  ;;  %v396_v17 = vmax.f32 %v266_v12, 0.0 }
  0xf7   :  { %v395_v15 = vmax.f32 %v261_v14, 0.0  ;;  %v969_v16 = vpop.f32.mrb[8].mxu0 }
  0xf8   :  { %v276_v18 = vadd.f32 %v969_v16, %v1308_v56  ;;  %v270_v19 = vpop.f32.mrb[9].mxu0 }
  0xf9   :  { %v271_v20 = vadd.f32 %v1308_v56, %v270_v19  ;;  %1028 = vmatprep.mubr.msk.f32.mxu1 %vm67_vm0, %v395_v15 }
  0xfa   :  { %1029 = vmatmul.mubr.msk.f32.gmra.mrb[6].mxu1 %vm67_vm0, %v396_v17  ;;  %v398_v23 = vmax.f32 %v276_v18, 0.0 }
  0xfb   :  { %v397_v21 = vmax.f32 %v271_v20, 0.0  ;;  %v972_v22 = vpop.f32.mrb[10].mxu0 }
  0xfc   :  { %v286_v24 = vadd.f32 %v972_v22, %v1308_v56  ;;  %v280_v25 = vpop.f32.mrb[11].mxu0 }
  0xfd   :  { %v281_v26 = vadd.f32 %v1308_v56, %v280_v25  ;;  %1031 = vmatprep.mubr.msk.f32.mxu1 %vm67_vm0, %v397_v21 }
  0xfe   :  { %1032 = vmatmul.mubr.msk.f32.gmra.mrb[8].mxu1 %vm67_vm0, %v398_v23  ;;  %v400_v29 = vmax.f32 %v286_v24, 0.0 }
  0xff   :  { %v399_v27 = vmax.f32 %v281_v26, 0.0  ;;  %v975_v28 = vpop.f32.mrb[12].mxu0  ;;  %v1377_v26 = vld [vmem:[%s1511_s4] ss:$0 sm:$0xff] }
 0x100   :  { %v296_v30 = vadd.f32 %v975_v28, %v1308_v56  ;;  %v290_v31 = vpop.f32.mrb[13].mxu0 }
 0x101   :  { %v291_v32 = vadd.f32 %v1308_v56, %v290_v31  ;;  %1034 = vmatprep.mubr.msk.f32.mxu1 %vm67_vm0, %v399_v27 }
 0x102   :  { %1035 = vmatmul.mubr.msk.f32.gmra.mrb[10].mxu1 %vm67_vm0, %v400_v29  ;;  %v402_v35 = vmax.f32 %v296_v30, 0.0 }
 0x103   :  { %v401_v33 = vmax.f32 %v291_v32, 0.0  ;;  %v978_v34 = vpop.f32.mrb[14].mxu0 }
 0x104   :  { %v306_v36 = vadd.f32 %v978_v34, %v1308_v56  ;;  %v300_v37 = vpop.f32.mrb[15].mxu0 }
 0x105   :  { %v301_v38 = vadd.f32 %v1308_v56, %v300_v37  ;;  %1037 = vmatprep.mubr.msk.f32.mxu1 %vm67_vm0, %v401_v33 }
 0x106   :  { %1038 = vmatmul.mubr.msk.f32.gmra.mrb[12].mxu1 %vm67_vm0, %v402_v35  ;;  %v404_v41 = vmax.f32 %v306_v36, 0.0 }
 0x107   :  { %v403_v39 = vmax.f32 %v301_v38, 0.0  ;;  %v981_v40 = vpop.f32.mrb[16].mxu0 }
 0x108   :  { %v316_v42 = vadd.f32 %v981_v40, %v1308_v56  ;;  %v310_v43 = vpop.f32.mrb[17].mxu0 }
 0x109   :  { %v311_v44 = vadd.f32 %v1308_v56, %v310_v43  ;;  %1040 = vmatprep.mubr.msk.f32.mxu1 %vm67_vm0, %v403_v39 }
 0x10a   :  { %1041 = vmatmul.mubr.msk.f32.gmra.mrb[14].mxu1 %vm67_vm0, %v404_v41  ;;  %v406_v47 = vmax.f32 %v316_v42, 0.0 }
 0x10b   :  { %v405_v45 = vmax.f32 %v311_v44, 0.0  ;;  %v984_v46 = vpop.f32.mrb[18].mxu0 }
 0x10c   :  { %v326_v48 = vadd.f32 %v984_v46, %v1308_v56  ;;  %v320_v49 = vpop.f32.mrb[19].mxu0 }
 0x10d   :  { %v321_v50 = vadd.f32 %v1308_v56, %v320_v49  ;;  %1043 = vmatprep.mubr.msk.f32.mxu1 %vm67_vm0, %v405_v45 }
 0x10e   :  { %1044 = vmatmul.mubr.msk.f32.gmra.mrb[16].mxu1 %vm67_vm0, %v406_v47  ;;  %v408_v53 = vmax.f32 %v326_v48, 0.0 }
 0x10f   :  { %v407_v51 = vmax.f32 %v321_v50, 0.0  ;;  %v987_v52 = vpop.f32.mrb[20].mxu0 }
 0x110   :  { %v336_v54 = vadd.f32 %v987_v52, %v1308_v56  ;;  %v330_v55 = vpop.f32.mrb[21].mxu0 }
 0x111   :  { %v331_v57 = vadd.f32 %v1308_v56, %v330_v55  ;;  %1046 = vmatprep.mubr.msk.f32.mxu1 %vm67_vm0, %v407_v51 }
 0x112   :  { %1047 = vmatmul.mubr.msk.f32.gmra.mrb[18].mxu1 %vm67_vm0, %v408_v53  ;;  %v410_v60 = vmax.f32 %v336_v54, 0.0 }
 0x113   :  { %v409_v58 = vmax.f32 %v331_v57, 0.0  ;;  %v990_v59 = vpop.f32.mrb[22].mxu0 }
 0x114   :  { %v346_v61 = vadd.f32 %v990_v59, %v1308_v56  ;;  %v340_v62 = vpop.f32.mrb[23].mxu0 }
 0x115   :  { %v341_v63 = vadd.f32 %v1308_v56, %v340_v62  ;;  %1049 = vmatprep.mubr.msk.f32.mxu1 %vm67_vm0, %v409_v58 }
 0x116   :  { %1050 = vmatmul.mubr.msk.f32.gmra.mrb[20].mxu1 %vm67_vm0, %v410_v60  ;;  %v412_v2 = vmax.f32 %v346_v61, 0.0 }
 0x117   :  { %v411_v0 = vmax.f32 %v341_v63, 0.0  ;;  %v993_v1 = vpop.f32.mrb[24].mxu0 }
 0x118   :  { %v356_v3 = vadd.f32 %v993_v1, %v1308_v56  ;;  %v350_v4 = vpop.f32.mrb[25].mxu0 }
 0x119   :  { %v351_v5 = vadd.f32 %v1308_v56, %v350_v4  ;;  %1052 = vmatprep.mubr.msk.f32.mxu1 %vm67_vm0, %v411_v0 }
 0x11a   :  { %1053 = vmatmul.mubr.msk.f32.gmra.mrb[22].mxu1 %vm67_vm0, %v412_v2  ;;  %v414_v8 = vmax.f32 %v356_v3, 0.0 }
 0x11b   :  { %v413_v6 = vmax.f32 %v351_v5, 0.0  ;;  %v996_v7 = vpop.f32.mrb[26].mxu0 }
 0x11c   :  { %v366_v9 = vadd.f32 %v996_v7, %v1308_v56  ;;  %v360_v10 = vpop.f32.mrb[27].mxu0 }
 0x11d   :  { %v361_v11 = vadd.f32 %v1308_v56, %v360_v10  ;;  %1055 = vmatprep.mubr.msk.f32.mxu1 %vm67_vm0, %v413_v6 }
 0x11e   :  { %1056 = vmatmul.mubr.msk.f32.gmra.mrb[24].mxu1 %vm67_vm0, %v414_v8  ;;  %v416_v14 = vmax.f32 %v366_v9, 0.0 }
 0x11f   :  { %v415_v12 = vmax.f32 %v361_v11, 0.0  ;;  %v999_v13 = vpop.f32.mrb[28].mxu0 }
 0x120   :  { %v376_v15 = vadd.f32 %v999_v13, %v1308_v56  ;;  %v370_v16 = vpop.f32.mrb[29].mxu0 }
 0x121   :  { %v371_v17 = vadd.f32 %v1308_v56, %v370_v16  ;;  %1058 = vmatprep.mubr.msk.f32.mxu1 %vm67_vm0, %v415_v12 }
 0x122   :  { %1059 = vmatmul.mubr.msk.f32.gmra.mrb[26].mxu1 %vm67_vm0, %v416_v14  ;;  %v418_v20 = vmax.f32 %v376_v15, 0.0 }
 0x123   :  { %v417_v18 = vmax.f32 %v371_v17, 0.0  ;;  %v1002_v19 = vpop.f32.mrb[30].mxu0 }
 0x124   :  { %v386_v21 = vadd.f32 %v1002_v19, %v1308_v56  ;;  %v380_v22 = vpop.f32.mrb[31].mxu0 }
 0x125   :  { %v381_v23 = vadd.f32 %v1308_v56, %v380_v22  ;;  %1061 = vmatprep.mubr.msk.f32.mxu1 %vm67_vm0, %v417_v18 }
 0x126   :  { %1062 = vmatmul.mubr.msk.f32.gmra.mrb[28].mxu1 %vm67_vm0, %v418_v20  ;;  %v420_v25 = vmax.f32 %v386_v21, 0.0 }
 0x127   :  { %v419_v24 = vmax.f32 %v381_v23, 0.0 }
 0x129   :  { %1064 = vmatprep.mubr.msk.f32.mxu1 %vm67_vm0, %v419_v24 }
 0x12a   :  { %1065 = vmatmul.mubr.msk.f32.gmra.mrb[30].mxu1 %vm67_vm0, %v420_v25 }
 0x1c1   :  { %v1021_v27 = vpop.f32.mrb[0].mxu1 }
 0x1c2   :  { %v604_v28 = vadd.f32 %v1021_v27, %v1377_v26  ;;  %v598_v29 = vpop.f32.mrb[1].mxu1 }
 0x1c3   :  { %v599_v56 = vadd.f32 %v1377_v26, %v598_v29 }
 0x1c4   :  { %758 = vst [vmem:[%s1512_s5 + $0x8] sm:$0xff] %v604_v28 }
 0x1c5   :  { %757 = vst [vmem:[%s1512_s5] sm:$0xff] %v599_v56  ;;  %v1024_v30 = vpop.f32.mrb[2].mxu1 }
 0x1c6   :  { %v614_v31 = vadd.f32 %v1024_v30, %v1377_v26  ;;  %v608_v32 = vpop.f32.mrb[3].mxu1 }
 0x1c7   :  { %v609_v33 = vadd.f32 %v1377_v26, %v608_v32 }
 0x1c8   :  { %760 = vst [vmem:[%s1512_s5 + $0x18] sm:$0xff] %v614_v31 }
 0x1c9   :  { %759 = vst [vmem:[%s1512_s5 + $0x10] sm:$0xff] %v609_v33  ;;  %v1027_v34 = vpop.f32.mrb[4].mxu1 }
 0x1ca   :  { %v624_v35 = vadd.f32 %v1027_v34, %v1377_v26  ;;  %v618_v36 = vpop.f32.mrb[5].mxu1 }
 0x1cb   :  { %v619_v37 = vadd.f32 %v1377_v26, %v618_v36 }
 0x1cc   :  { %762 = vst [vmem:[%s1512_s5 + $0x28] sm:$0xff] %v624_v35 }
 0x1cd   :  { %761 = vst [vmem:[%s1512_s5 + $0x20] sm:$0xff] %v619_v37  ;;  %v1030_v38 = vpop.f32.mrb[6].mxu1 }
 0x1ce   :  { %v634_v39 = vadd.f32 %v1030_v38, %v1377_v26  ;;  %v628_v40 = vpop.f32.mrb[7].mxu1 }
 0x1cf   :  { %v629_v41 = vadd.f32 %v1377_v26, %v628_v40 }
 0x1d0   :  { %764 = vst [vmem:[%s1512_s5 + $0x38] sm:$0xff] %v634_v39 }
 0x1d1   :  { %763 = vst [vmem:[%s1512_s5 + $0x30] sm:$0xff] %v629_v41  ;;  %v1033_v42 = vpop.f32.mrb[8].mxu1 }
 0x1d2   :  { %v644_v43 = vadd.f32 %v1033_v42, %v1377_v26  ;;  %v638_v44 = vpop.f32.mrb[9].mxu1 }
 0x1d3   :  { %v639_v45 = vadd.f32 %v1377_v26, %v638_v44 }
 0x1d4   :  { %766 = vst [vmem:[%s1512_s5 + $0x48] sm:$0xff] %v644_v43 }
 0x1d5   :  { %765 = vst [vmem:[%s1512_s5 + $0x40] sm:$0xff] %v639_v45  ;;  %v1036_v46 = vpop.f32.mrb[10].mxu1 }
 0x1d6   :  { %v654_v47 = vadd.f32 %v1036_v46, %v1377_v26  ;;  %v648_v48 = vpop.f32.mrb[11].mxu1 }
 0x1d7   :  { %v649_v49 = vadd.f32 %v1377_v26, %v648_v48 }
 0x1d8   :  { %768 = vst [vmem:[%s1512_s5 + $0x58] sm:$0xff] %v654_v47 }
 0x1d9   :  { %767 = vst [vmem:[%s1512_s5 + $0x50] sm:$0xff] %v649_v49  ;;  %v1039_v50 = vpop.f32.mrb[12].mxu1 }
 0x1da   :  { %v664_v51 = vadd.f32 %v1039_v50, %v1377_v26  ;;  %v658_v52 = vpop.f32.mrb[13].mxu1 }
 0x1db   :  { %v659_v53 = vadd.f32 %v1377_v26, %v658_v52 }
 0x1dc   :  { %770 = vst [vmem:[%s1512_s5 + $0x68] sm:$0xff] %v664_v51 }
 0x1dd   :  { %769 = vst [vmem:[%s1512_s5 + $0x60] sm:$0xff] %v659_v53  ;;  %v1042_v54 = vpop.f32.mrb[14].mxu1 }
 0x1de   :  { %v674_v55 = vadd.f32 %v1042_v54, %v1377_v26  ;;  %v668_v57 = vpop.f32.mrb[15].mxu1 }
 0x1df   :  { %v669_v58 = vadd.f32 %v1377_v26, %v668_v57 }
 0x1e0   :  { %772 = vst [vmem:[%s1512_s5 + $0x78] sm:$0xff] %v674_v55 }
 0x1e1   :  { %771 = vst [vmem:[%s1512_s5 + $0x70] sm:$0xff] %v669_v58  ;;  %v1045_v59 = vpop.f32.mrb[16].mxu1 }
 0x1e2   :  { %v684_v60 = vadd.f32 %v1045_v59, %v1377_v26  ;;  %v678_v61 = vpop.f32.mrb[17].mxu1 }
 0x1e3   :  { %v679_v62 = vadd.f32 %v1377_v26, %v678_v61 }
 0x1e4   :  { %774 = vst [vmem:[%s1512_s5 + $0x88] sm:$0xff] %v684_v60 }
 0x1e5   :  { %773 = vst [vmem:[%s1512_s5 + $0x80] sm:$0xff] %v679_v62  ;;  %v1048_v63 = vpop.f32.mrb[18].mxu1 }
 0x1e6   :  { %v694_v0 = vadd.f32 %v1048_v63, %v1377_v26  ;;  %v688_v1 = vpop.f32.mrb[19].mxu1 }
 0x1e7   :  { %v689_v2 = vadd.f32 %v1377_v26, %v688_v1 }
 0x1e8   :  { %776 = vst [vmem:[%s1512_s5 + $0x98] sm:$0xff] %v694_v0 }
 0x1e9   :  { %775 = vst [vmem:[%s1512_s5 + $0x90] sm:$0xff] %v689_v2  ;;  %v1051_v3 = vpop.f32.mrb[20].mxu1 }
 0x1ea   :  { %v704_v4 = vadd.f32 %v1051_v3, %v1377_v26  ;;  %v698_v5 = vpop.f32.mrb[21].mxu1 }
 0x1eb   :  { %v699_v6 = vadd.f32 %v1377_v26, %v698_v5 }
 0x1ec   :  { %778 = vst [vmem:[%s1512_s5 + $0xa8] sm:$0xff] %v704_v4 }
 0x1ed   :  { %777 = vst [vmem:[%s1512_s5 + $0xa0] sm:$0xff] %v699_v6  ;;  %v1054_v7 = vpop.f32.mrb[22].mxu1 }
 0x1ee   :  { %v714_v8 = vadd.f32 %v1054_v7, %v1377_v26  ;;  %v708_v9 = vpop.f32.mrb[23].mxu1 }
 0x1ef   :  { %v709_v10 = vadd.f32 %v1377_v26, %v708_v9 }
 0x1f0   :  { %780 = vst [vmem:[%s1512_s5 + $0xb8] sm:$0xff] %v714_v8 }
 0x1f1   :  { %779 = vst [vmem:[%s1512_s5 + $0xb0] sm:$0xff] %v709_v10  ;;  %v1057_v11 = vpop.f32.mrb[24].mxu1 }
 0x1f2   :  { %v724_v12 = vadd.f32 %v1057_v11, %v1377_v26  ;;  %v718_v13 = vpop.f32.mrb[25].mxu1 }
 0x1f3   :  { %v719_v14 = vadd.f32 %v1377_v26, %v718_v13 }
 0x1f4   :  { %782 = vst [vmem:[%s1512_s5 + $0xc8] sm:$0xff] %v724_v12 }
 0x1f5   :  { %781 = vst [vmem:[%s1512_s5 + $0xc0] sm:$0xff] %v719_v14  ;;  %v1060_v15 = vpop.f32.mrb[26].mxu1 }
 0x1f6   :  { %v734_v16 = vadd.f32 %v1060_v15, %v1377_v26  ;;  %v728_v17 = vpop.f32.mrb[27].mxu1 }
 0x1f7   :  { %v729_v18 = vadd.f32 %v1377_v26, %v728_v17 }
 0x1f8   :  { %784 = vst [vmem:[%s1512_s5 + $0xd8] sm:$0xff] %v734_v16 }
 0x1f9   :  { %783 = vst [vmem:[%s1512_s5 + $0xd0] sm:$0xff] %v729_v18  ;;  %v1063_v19 = vpop.f32.mrb[28].mxu1 }
 0x1fa   :  { %v744_v20 = vadd.f32 %v1063_v19, %v1377_v26  ;;  %v738_v21 = vpop.f32.mrb[29].mxu1 }
 0x1fb   :  { %v739_v22 = vadd.f32 %v1377_v26, %v738_v21 }
 0x1fc   :  { %786 = vst [vmem:[%s1512_s5 + $0xe8] sm:$0xff] %v744_v20 }
 0x1fd   :  { %785 = vst [vmem:[%s1512_s5 + $0xe0] sm:$0xff] %v739_v22  ;;  %v1066_v23 = vpop.f32.mrb[30].mxu1 }
 0x1fe   :  { %v754_v24 = vadd.f32 %v1066_v23, %v1377_v26  ;;  %v748_v25 = vpop.f32.mrb[31].mxu1 }
 0x1ff   :  { %v749_v27 = vadd.f32 %v1377_v26, %v748_v25 }
 0x200   :  { %788 = vst [vmem:[%s1512_s5 + $0xf8] sm:$0xff] %v754_v24 }
 0x201   :  { %787 = vst [vmem:[%s1512_s5 + $0xf0] sm:$0xff] %v749_v27 }

// kernel: sugrl_forward.3
= control target key start
LH: loop header
LB: loop body
LE: loop exit
PB: predicated region body
PF: predicated region fallthrough
CT: control target
= control target key end

     0   :  { %v616_v0 = vmov 0.0|0.0   ;;  %s1048_s1 = inlined_call_operand.vmem [shape: f32[256,128], index: 1, kind: input, shape index: {}]   ;;  %s1049_s0 = inlined_call_operand.vmem [shape: f32[256,256], index: 0, kind: input, shape index: {}]   ;;  %s1050_s2 = inlined_call_operand.vmem [shape: f32[256,128], index: 2, kind: output, shape index: {}]  }
   0x1   :  { %535 = vmatprep.subr.bf16.mxu0 %v616_v0  ;;  %583 = vmatprep.subr.bf16.mxu1 %v616_v0  ;;  %v143_v1 = vld [vmem:[%s1048_s1] sm:$0xff]  ;;  %v144_v2 = vld [vmem:[%s1048_s1 + $0x8] sm:$0xff]  ;;  %v145_v3 = vld [vmem:[%s1048_s1 + $0x10] sm:$0xff] }
   0x2   :  { %v536_v4 = vpack.c.bf16 %v144_v2, %v143_v1  ;;  %v146_v5 = vld [vmem:[%s1048_s1 + $0x18] sm:$0xff]  ;;  %v147_v7 = vld [vmem:[%s1048_s1 + $0x20] sm:$0xff]  ;;  %v148_v8 = vld [vmem:[%s1048_s1 + $0x28] sm:$0xff] }
   0x3   :  { %v539_v6 = vpack.c.bf16 %v146_v5, %v145_v3  ;;  %v542_v9 = vpack.c.bf16 %v148_v8, %v147_v7  ;;  %v149_v10 = vld [vmem:[%s1048_s1 + $0x30] sm:$0xff]  ;;  %v150_v11 = vld [vmem:[%s1048_s1 + $0x38] sm:$0xff]  ;;  %v80_v12 = vld [vmem:[%s1049_s0 + $0x8] sm:$0xff] }
   0x4   :  { %537 = vmatpush1.bf16.msra.mxu0 %v536_v4  ;;  %599 = vmatpush1.bf16.msra.mxu1 %v536_v4  ;;  %v545_v13 = vpack.c.bf16 %v150_v11, %v149_v10  ;;  %v112_v14 = vld [vmem:[%s1049_s0 + $0x108] sm:$0xff]  ;;  %v151_v15 = vld [vmem:[%s1048_s1 + $0x40] sm:$0xff]  ;;  %v153_v18 = vld [vmem:[%s1048_s1 + $0x50] sm:$0xff] }
   0x5   :  { %538 = vmatprep.subr.bf16.mxu0 %v616_v0  ;;  %584 = vmatprep.subr.bf16.mxu1 %v616_v0  ;;  %v152_v16 = vld [vmem:[%s1048_s1 + $0x48] sm:$0xff]  ;;  %v154_v19 = vld [vmem:[%s1048_s1 + $0x58] sm:$0xff]  ;;  %v155_v21 = vld [vmem:[%s1048_s1 + $0x60] sm:$0xff] }
   0x6   :  { %239 = vmatprep.mubr.f32.mxu0 %v80_v12  ;;  %319 = vmatprep.mubr.f32.mxu1 %v112_v14  ;;  %v548_v17 = vpack.c.bf16 %v152_v16, %v151_v15  ;;  %v551_v20 = vpack.c.bf16 %v154_v19, %v153_v18  ;;  %v156_v22 = vld [vmem:[%s1048_s1 + $0x68] sm:$0xff]  ;;  %v157_v24 = vld [vmem:[%s1048_s1 + $0x70] sm:$0xff]  ;;  %v158_v25 = vld [vmem:[%s1048_s1 + $0x78] sm:$0xff] }
   0x7   :  { %v554_v23 = vpack.c.bf16 %v156_v22, %v155_v21  ;;  %v557_v26 = vpack.c.bf16 %v158_v25, %v157_v24  ;;  %v159_v27 = vld [vmem:[%s1048_s1 + $0x80] sm:$0xff]  ;;  %v160_v28 = vld [vmem:[%s1048_s1 + $0x88] sm:$0xff]  ;;  %v161_v30 = vld [vmem:[%s1048_s1 + $0x90] sm:$0xff] }
   0x8   :  { %540 = vmatpush1.bf16.msra.mxu0 %v539_v6  ;;  %600 = vmatpush1.bf16.msra.mxu1 %v539_v6  ;;  %v560_v29 = vpack.c.bf16 %v160_v28, %v159_v27  ;;  %v162_v31 = vld [vmem:[%s1048_s1 + $0x98] sm:$0xff]  ;;  %v163_v33 = vld [vmem:[%s1048_s1 + $0xa0] sm:$0xff]  ;;  %v164_v34 = vld [vmem:[%s1048_s1 + $0xa8] sm:$0xff] }
   0x9   :  { %541 = vmatprep.subr.bf16.mxu0 %v616_v0  ;;  %585 = vmatprep.subr.bf16.mxu1 %v616_v0  ;;  %v563_v32 = vpack.c.bf16 %v162_v31, %v161_v30  ;;  %v566_v35 = vpack.c.bf16 %v164_v34, %v163_v33  ;;  %v165_v36 = vld [vmem:[%s1048_s1 + $0xb0] sm:$0xff]  ;;  %v166_v37 = vld [vmem:[%s1048_s1 + $0xb8] sm:$0xff]  ;;  %v167_v39 = vld [vmem:[%s1048_s1 + $0xc0] sm:$0xff] }
   0xa   :  { %v569_v38 = vpack.c.bf16 %v166_v37, %v165_v36  ;;  %v168_v40 = vld [vmem:[%s1048_s1 + $0xc8] sm:$0xff]  ;;  %v169_v42 = vld [vmem:[%s1048_s1 + $0xd0] sm:$0xff]  ;;  %v170_v43 = vld [vmem:[%s1048_s1 + $0xd8] sm:$0xff] }
   0xb   :  { %v572_v41 = vpack.c.bf16 %v168_v40, %v167_v39  ;;  %v575_v44 = vpack.c.bf16 %v170_v43, %v169_v42  ;;  %v171_v45 = vld [vmem:[%s1048_s1 + $0xe0] sm:$0xff]  ;;  %v172_v46 = vld [vmem:[%s1048_s1 + $0xe8] sm:$0xff]  ;;  %v173_v48 = vld [vmem:[%s1048_s1 + $0xf0] sm:$0xff] }
   0xc   :  { %543 = vmatpush1.bf16.msra.mxu0 %v542_v9  ;;  %601 = vmatpush1.bf16.msra.mxu1 %v542_v9  ;;  %v578_v47 = vpack.c.bf16 %v172_v46, %v171_v45  ;;  %v174_v49 = vld [vmem:[%s1048_s1 + $0xf8] sm:$0xff]  ;;  %v79_v51 = vld [vmem:[%s1049_s0] sm:$0xff]  ;;  %v81_v55 = vld [vmem:[%s1049_s0 + $0x10] sm:$0xff] }
   0xd   :  { %544 = vmatprep.subr.bf16.mxu0 %v616_v0  ;;  %586 = vmatprep.subr.bf16.mxu1 %v616_v0  ;;  %v581_v50 = vpack.c.bf16 %v174_v49, %v173_v48  ;;  %v111_v52 = vld [vmem:[%s1049_s0 + $0x100] sm:$0xff]  ;;  %v82_v53 = vld [vmem:[%s1049_s0 + $0x18] sm:$0xff]  ;;  %v113_v56 = vld [vmem:[%s1049_s0 + $0x110] sm:$0xff] }
   0xe   :  { %v114_v54 = vld [vmem:[%s1049_s0 + $0x118] sm:$0xff]  ;;  %v84_v57 = vld [vmem:[%s1049_s0 + $0x28] sm:$0xff]  ;;  %v83_v59 = vld [vmem:[%s1049_s0 + $0x20] sm:$0xff] }
   0xf   :  { %v116_v58 = vld [vmem:[%s1049_s0 + $0x128] sm:$0xff]  ;;  %v115_v60 = vld [vmem:[%s1049_s0 + $0x120] sm:$0xff]  ;;  %v86_v61 = vld [vmem:[%s1049_s0 + $0x38] sm:$0xff] }
  0x10   :  { %546 = vmatpush1.bf16.msra.mxu0 %v545_v13  ;;  %602 = vmatpush1.bf16.msra.mxu1 %v545_v13  ;;  %v118_v62 = vld [vmem:[%s1049_s0 + $0x138] sm:$0xff]  ;;  %v85_v63 = vld [vmem:[%s1049_s0 + $0x30] sm:$0xff]  ;;  %v88_v1 = vld [vmem:[%s1049_s0 + $0x48] sm:$0xff] }
  0x11   :  { %547 = vmatprep.subr.bf16.mxu0 %v616_v0  ;;  %587 = vmatprep.subr.bf16.mxu1 %v616_v0  ;;  %v120_v2 = vld [vmem:[%s1049_s0 + $0x148] sm:$0xff]  ;;  %v87_v3 = vld [vmem:[%s1049_s0 + $0x40] sm:$0xff]  ;;  %v90_v5 = vld [vmem:[%s1049_s0 + $0x58] sm:$0xff] }
  0x12   :  { %v119_v4 = vld [vmem:[%s1049_s0 + $0x140] sm:$0xff]  ;;  %v122_v6 = vld [vmem:[%s1049_s0 + $0x158] sm:$0xff]  ;;  %v89_v7 = vld [vmem:[%s1049_s0 + $0x50] sm:$0xff] }
  0x13   :  { %v121_v8 = vld [vmem:[%s1049_s0 + $0x150] sm:$0xff]  ;;  %v92_v9 = vld [vmem:[%s1049_s0 + $0x68] sm:$0xff]  ;;  %v91_v11 = vld [vmem:[%s1049_s0 + $0x60] sm:$0xff] }
  0x14   :  { %549 = vmatpush1.bf16.msra.mxu0 %v548_v17  ;;  %603 = vmatpush1.bf16.msra.mxu1 %v548_v17  ;;  %v124_v10 = vld [vmem:[%s1049_s0 + $0x168] sm:$0xff]  ;;  %v123_v12 = vld [vmem:[%s1049_s0 + $0x160] sm:$0xff]  ;;  %v94_v13 = vld [vmem:[%s1049_s0 + $0x78] sm:$0xff] }
  0x15   :  { %550 = vmatprep.subr.bf16.mxu0 %v616_v0  ;;  %588 = vmatprep.subr.bf16.mxu1 %v616_v0  ;;  %v126_v14 = vld [vmem:[%s1049_s0 + $0x178] sm:$0xff]  ;;  %v93_v15 = vld [vmem:[%s1049_s0 + $0x70] sm:$0xff]  ;;  %v96_v17 = vld [vmem:[%s1049_s0 + $0x88] sm:$0xff] }
  0x16   :  { %v125_v16 = vld [vmem:[%s1049_s0 + $0x170] sm:$0xff]  ;;  %v128_v18 = vld [vmem:[%s1049_s0 + $0x188] sm:$0xff]  ;;  %v95_v19 = vld [vmem:[%s1049_s0 + $0x80] sm:$0xff] }
  0x17   :  { %v98_v21 = vld [vmem:[%s1049_s0 + $0x98] sm:$0xff]  ;;  %v129_v24 = vld [vmem:[%s1049_s0 + $0x190] sm:$0xff]  ;;  %v100_v25 = vld [vmem:[%s1049_s0 + $0xa8] sm:$0xff] }
  0x18   :  { %552 = vmatpush1.bf16.msra.mxu0 %v551_v20  ;;  %604 = vmatpush1.bf16.msra.mxu1 %v551_v20  ;;  %v127_v20 = vld [vmem:[%s1049_s0 + $0x180] sm:$0xff]  ;;  %v130_v22 = vld [vmem:[%s1049_s0 + $0x198] sm:$0xff]  ;;  %v101_v31 = vld [vmem:[%s1049_s0 + $0xb0] sm:$0xff] }
  0x19   :  { %553 = vmatprep.subr.bf16.mxu0 %v616_v0  ;;  %589 = vmatprep.subr.bf16.mxu1 %v616_v0  ;;  %v99_v27 = vld [vmem:[%s1049_s0 + $0xa0] sm:$0xff]  ;;  %v134_v30 = vld [vmem:[%s1049_s0 + $0x1b8] sm:$0xff]  ;;  %v104_v33 = vld [vmem:[%s1049_s0 + $0xc8] sm:$0xff] }
  0x1a   :  { %v131_v28 = vld [vmem:[%s1049_s0 + $0x1a0] sm:$0xff]  ;;  %v136_v34 = vld [vmem:[%s1049_s0 + $0x1c8] sm:$0xff]  ;;  %v106_v37 = vld [vmem:[%s1049_s0 + $0xd8] sm:$0xff] }
  0x1b   :  { %v135_v36 = vld [vmem:[%s1049_s0 + $0x1c0] sm:$0xff]  ;;  %v105_v39 = vld [vmem:[%s1049_s0 + $0xd0] sm:$0xff]  ;;  %v140_v42 = vld [vmem:[%s1049_s0 + $0x1e8] sm:$0xff] }
  0x1c   :  { %555 = vmatpush1.bf16.msra.mxu0 %v554_v23  ;;  %605 = vmatpush1.bf16.msra.mxu1 %v554_v23  ;;  %v97_v23 = vld [vmem:[%s1049_s0 + $0x90] sm:$0xff]  ;;  %v107_v43 = vld [vmem:[%s1049_s0 + $0xe0] sm:$0xff]  ;;  %v110_v45 = vld [vmem:[%s1049_s0 + $0xf8] sm:$0xff] }
  0x1d   :  { %556 = vmatprep.subr.bf16.mxu0 %v616_v0  ;;  %590 = vmatprep.subr.bf16.mxu1 %v616_v0  ;;  %v137_v40 = vld [vmem:[%s1049_s0 + $0x1d0] sm:$0xff]  ;;  %v142_v46 = vld [vmem:[%s1049_s0 + $0x1f8] sm:$0xff] }
  0x1e   :  { %v141_v48 = vld [vmem:[%s1049_s0 + $0x1f0] sm:$0xff] }
  0x20   :  { %558 = vmatpush1.bf16.msra.mxu0 %v557_v26  ;;  %606 = vmatpush1.bf16.msra.mxu1 %v557_v26  ;;  %v132_v26 = vld [vmem:[%s1049_s0 + $0x1a8] sm:$0xff] }
  0x21   :  { %559 = vmatprep.subr.bf16.mxu0 %v616_v0  ;;  %591 = vmatprep.subr.bf16.mxu1 %v616_v0 }
  0x24   :  { %561 = vmatpush1.bf16.msra.mxu0 %v560_v29  ;;  %607 = vmatpush1.bf16.msra.mxu1 %v560_v29  ;;  %v102_v29 = vld [vmem:[%s1049_s0 + $0xb8] sm:$0xff] }
  0x25   :  { %562 = vmatprep.subr.bf16.mxu0 %v616_v0  ;;  %592 = vmatprep.subr.bf16.mxu1 %v616_v0 }
  0x28   :  { %564 = vmatpush1.bf16.msra.mxu0 %v563_v32  ;;  %608 = vmatpush1.bf16.msra.mxu1 %v563_v32  ;;  %v133_v32 = vld [vmem:[%s1049_s0 + $0x1b0] sm:$0xff] }
  0x29   :  { %565 = vmatprep.subr.bf16.mxu0 %v616_v0  ;;  %593 = vmatprep.subr.bf16.mxu1 %v616_v0 }
  0x2c   :  { %567 = vmatpush1.bf16.msra.mxu0 %v566_v35  ;;  %609 = vmatpush1.bf16.msra.mxu1 %v566_v35  ;;  %v103_v35 = vld [vmem:[%s1049_s0 + $0xc0] sm:$0xff] }
  0x2d   :  { %568 = vmatprep.subr.bf16.mxu0 %v616_v0  ;;  %594 = vmatprep.subr.bf16.mxu1 %v616_v0 }
  0x30   :  { %570 = vmatpush1.bf16.msra.mxu0 %v569_v38  ;;  %610 = vmatpush1.bf16.msra.mxu1 %v569_v38  ;;  %v138_v38 = vld [vmem:[%s1049_s0 + $0x1d8] sm:$0xff] }
  0x31   :  { %571 = vmatprep.subr.bf16.mxu0 %v616_v0  ;;  %595 = vmatprep.subr.bf16.mxu1 %v616_v0 }
  0x34   :  { %573 = vmatpush1.bf16.msra.mxu0 %v572_v41  ;;  %611 = vmatpush1.bf16.msra.mxu1 %v572_v41  ;;  %v108_v41 = vld [vmem:[%s1049_s0 + $0xe8] sm:$0xff] }
  0x35   :  { %574 = vmatprep.subr.bf16.mxu0 %v616_v0  ;;  %596 = vmatprep.subr.bf16.mxu1 %v616_v0 }
  0x38   :  { %576 = vmatpush1.bf16.msra.mxu0 %v575_v44  ;;  %612 = vmatpush1.bf16.msra.mxu1 %v575_v44  ;;  %v139_v44 = vld [vmem:[%s1049_s0 + $0x1e0] sm:$0xff] }
  0x39   :  { %577 = vmatprep.subr.bf16.mxu0 %v616_v0  ;;  %597 = vmatprep.subr.bf16.mxu1 %v616_v0 }
  0x3c   :  { %579 = vmatpush1.bf16.msra.mxu0 %v578_v47  ;;  %613 = vmatpush1.bf16.msra.mxu1 %v578_v47  ;;  %v109_v47 = vld [vmem:[%s1049_s0 + $0xf0] sm:$0xff] }
  0x3d   :  { %580 = vmatprep.subr.bf16.mxu0 %v616_v0  ;;  %598 = vmatprep.subr.bf16.mxu1 %v616_v0  ;;  %v117_v0 = vld [vmem:[%s1049_s0 + $0x130] sm:$0xff] }
  0x40   :  { %582 = vmatpush1.bf16.msra.mxu0 %v581_v50  ;;  %614 = vmatpush1.bf16.msra.mxu1 %v581_v50 }
  0x43   :  { %240 = vmatmul.mubr.f32.vlgmr.msra.gmra.mrb[0].mxu0 %v79_v51  ;;  %320 = vmatmul.mubr.f32.vlgmr.msra.gmra.mrb[0].mxu1 %v111_v52 }
  0x44   :  { %244 = vmatprep.mubr.f32.mxu0 %v82_v53  ;;  %324 = vmatprep.mubr.f32.mxu1 %v114_v54 }
  0x47   :  { %245 = vmatmul.mubr.f32.gmra.mrb[2].mxu0 %v81_v55  ;;  %325 = vmatmul.mubr.f32.gmra.mrb[2].mxu1 %v113_v56 }
  0x48   :  { %249 = vmatprep.mubr.f32.mxu0 %v84_v57  ;;  %329 = vmatprep.mubr.f32.mxu1 %v116_v58 }
  0x4b   :  { %250 = vmatmul.mubr.f32.gmra.mrb[4].mxu0 %v83_v59  ;;  %330 = vmatmul.mubr.f32.gmra.mrb[4].mxu1 %v115_v60 }
  0x4c   :  { %254 = vmatprep.mubr.f32.mxu0 %v86_v61  ;;  %334 = vmatprep.mubr.f32.mxu1 %v118_v62 }
  0x4f   :  { %255 = vmatmul.mubr.f32.gmra.mrb[6].mxu0 %v85_v63  ;;  %335 = vmatmul.mubr.f32.gmra.mrb[6].mxu1 %v117_v0 }
  0x50   :  { %259 = vmatprep.mubr.f32.mxu0 %v88_v1  ;;  %339 = vmatprep.mubr.f32.mxu1 %v120_v2 }
  0x53   :  { %260 = vmatmul.mubr.f32.gmra.mrb[8].mxu0 %v87_v3  ;;  %340 = vmatmul.mubr.f32.gmra.mrb[8].mxu1 %v119_v4 }
  0x54   :  { %264 = vmatprep.mubr.f32.mxu0 %v90_v5  ;;  %344 = vmatprep.mubr.f32.mxu1 %v122_v6 }
  0x57   :  { %265 = vmatmul.mubr.f32.gmra.mrb[10].mxu0 %v89_v7  ;;  %345 = vmatmul.mubr.f32.gmra.mrb[10].mxu1 %v121_v8 }
  0x58   :  { %269 = vmatprep.mubr.f32.mxu0 %v92_v9  ;;  %349 = vmatprep.mubr.f32.mxu1 %v124_v10 }
  0x5b   :  { %270 = vmatmul.mubr.f32.gmra.mrb[12].mxu0 %v91_v11  ;;  %350 = vmatmul.mubr.f32.gmra.mrb[12].mxu1 %v123_v12 }
  0x5c   :  { %274 = vmatprep.mubr.f32.mxu0 %v94_v13  ;;  %354 = vmatprep.mubr.f32.mxu1 %v126_v14 }
  0x5f   :  { %275 = vmatmul.mubr.f32.gmra.mrb[14].mxu0 %v93_v15  ;;  %355 = vmatmul.mubr.f32.gmra.mrb[14].mxu1 %v125_v16 }
  0x60   :  { %279 = vmatprep.mubr.f32.mxu0 %v96_v17  ;;  %359 = vmatprep.mubr.f32.mxu1 %v128_v18 }
  0x63   :  { %280 = vmatmul.mubr.f32.gmra.mrb[16].mxu0 %v95_v19  ;;  %360 = vmatmul.mubr.f32.gmra.mrb[16].mxu1 %v127_v20 }
  0x64   :  { %284 = vmatprep.mubr.f32.mxu0 %v98_v21  ;;  %364 = vmatprep.mubr.f32.mxu1 %v130_v22 }
  0x67   :  { %285 = vmatmul.mubr.f32.gmra.mrb[18].mxu0 %v97_v23  ;;  %365 = vmatmul.mubr.f32.gmra.mrb[18].mxu1 %v129_v24 }
  0x68   :  { %289 = vmatprep.mubr.f32.mxu0 %v100_v25  ;;  %369 = vmatprep.mubr.f32.mxu1 %v132_v26 }
  0x6b   :  { %290 = vmatmul.mubr.f32.gmra.mrb[20].mxu0 %v99_v27  ;;  %370 = vmatmul.mubr.f32.gmra.mrb[20].mxu1 %v131_v28 }
  0x6c   :  { %294 = vmatprep.mubr.f32.mxu0 %v102_v29  ;;  %374 = vmatprep.mubr.f32.mxu1 %v134_v30 }
  0x6f   :  { %295 = vmatmul.mubr.f32.gmra.mrb[22].mxu0 %v101_v31  ;;  %375 = vmatmul.mubr.f32.gmra.mrb[22].mxu1 %v133_v32 }
  0x70   :  { %299 = vmatprep.mubr.f32.mxu0 %v104_v33  ;;  %379 = vmatprep.mubr.f32.mxu1 %v136_v34 }
  0x73   :  { %300 = vmatmul.mubr.f32.gmra.mrb[24].mxu0 %v103_v35  ;;  %380 = vmatmul.mubr.f32.gmra.mrb[24].mxu1 %v135_v36 }
  0x74   :  { %304 = vmatprep.mubr.f32.mxu0 %v106_v37  ;;  %384 = vmatprep.mubr.f32.mxu1 %v138_v38 }
  0x77   :  { %305 = vmatmul.mubr.f32.gmra.mrb[26].mxu0 %v105_v39  ;;  %385 = vmatmul.mubr.f32.gmra.mrb[26].mxu1 %v137_v40 }
  0x78   :  { %309 = vmatprep.mubr.f32.mxu0 %v108_v41  ;;  %389 = vmatprep.mubr.f32.mxu1 %v140_v42 }
  0x7b   :  { %310 = vmatmul.mubr.f32.gmra.mrb[28].mxu0 %v107_v43  ;;  %390 = vmatmul.mubr.f32.gmra.mrb[28].mxu1 %v139_v44 }
  0x7c   :  { %314 = vmatprep.mubr.f32.mxu0 %v110_v45  ;;  %394 = vmatprep.mubr.f32.mxu1 %v142_v46 }
  0x7f   :  { %315 = vmatmul.mubr.f32.gmra.mrb[30].mxu0 %v109_v47  ;;  %395 = vmatmul.mubr.f32.gmra.mrb[30].mxu1 %v141_v48 }
 0x116   :  { %v241_v49 = vpop.f32.mrb[0].mxu0  ;;  %v321_v50 = vpop.f32.mrb[0].mxu1 }
 0x117   :  { %499 = vst [vmem:[%s1050_s2] sm:$0xff] %v241_v49  ;;  %515 = vst [vmem:[%s1050_s2 + $0x80] sm:$0xff] %v321_v50  ;;  %v243_v51 = vpop.f32.mrb[1].mxu0  ;;  %v323_v52 = vpop.f32.mrb[1].mxu1 }
 0x11a   :  { %v246_v53 = vpop.f32.mrb[2].mxu0  ;;  %v326_v54 = vpop.f32.mrb[2].mxu1 }
 0x11b   :  { %500 = vst [vmem:[%s1050_s2 + $0x8] sm:$0xff] %v246_v53  ;;  %516 = vst [vmem:[%s1050_s2 + $0x88] sm:$0xff] %v326_v54  ;;  %v248_v55 = vpop.f32.mrb[3].mxu0  ;;  %v328_v56 = vpop.f32.mrb[3].mxu1 }
 0x11e   :  { %v251_v57 = vpop.f32.mrb[4].mxu0  ;;  %v331_v58 = vpop.f32.mrb[4].mxu1 }
 0x11f   :  { %501 = vst [vmem:[%s1050_s2 + $0x10] sm:$0xff] %v251_v57  ;;  %517 = vst [vmem:[%s1050_s2 + $0x90] sm:$0xff] %v331_v58  ;;  %v253_v59 = vpop.f32.mrb[5].mxu0  ;;  %v333_v60 = vpop.f32.mrb[5].mxu1 }
 0x122   :  { %v256_v61 = vpop.f32.mrb[6].mxu0  ;;  %v336_v62 = vpop.f32.mrb[6].mxu1 }
 0x123   :  { %502 = vst [vmem:[%s1050_s2 + $0x18] sm:$0xff] %v256_v61  ;;  %518 = vst [vmem:[%s1050_s2 + $0x98] sm:$0xff] %v336_v62  ;;  %v258_v63 = vpop.f32.mrb[7].mxu0  ;;  %v338_v0 = vpop.f32.mrb[7].mxu1 }
 0x126   :  { %v261_v1 = vpop.f32.mrb[8].mxu0  ;;  %v341_v2 = vpop.f32.mrb[8].mxu1 }
 0x127   :  { %503 = vst [vmem:[%s1050_s2 + $0x20] sm:$0xff] %v261_v1  ;;  %519 = vst [vmem:[%s1050_s2 + $0xa0] sm:$0xff] %v341_v2  ;;  %v263_v3 = vpop.f32.mrb[9].mxu0  ;;  %v343_v4 = vpop.f32.mrb[9].mxu1 }
 0x12a   :  { %v266_v5 = vpop.f32.mrb[10].mxu0  ;;  %v346_v6 = vpop.f32.mrb[10].mxu1 }
 0x12b   :  { %504 = vst [vmem:[%s1050_s2 + $0x28] sm:$0xff] %v266_v5  ;;  %520 = vst [vmem:[%s1050_s2 + $0xa8] sm:$0xff] %v346_v6  ;;  %v268_v7 = vpop.f32.mrb[11].mxu0  ;;  %v348_v8 = vpop.f32.mrb[11].mxu1 }
 0x12e   :  { %v271_v9 = vpop.f32.mrb[12].mxu0  ;;  %v351_v10 = vpop.f32.mrb[12].mxu1 }
 0x12f   :  { %505 = vst [vmem:[%s1050_s2 + $0x30] sm:$0xff] %v271_v9  ;;  %521 = vst [vmem:[%s1050_s2 + $0xb0] sm:$0xff] %v351_v10  ;;  %v273_v11 = vpop.f32.mrb[13].mxu0  ;;  %v353_v12 = vpop.f32.mrb[13].mxu1 }
 0x132   :  { %v276_v13 = vpop.f32.mrb[14].mxu0  ;;  %v356_v14 = vpop.f32.mrb[14].mxu1 }
 0x133   :  { %506 = vst [vmem:[%s1050_s2 + $0x38] sm:$0xff] %v276_v13  ;;  %522 = vst [vmem:[%s1050_s2 + $0xb8] sm:$0xff] %v356_v14  ;;  %v278_v15 = vpop.f32.mrb[15].mxu0  ;;  %v358_v16 = vpop.f32.mrb[15].mxu1 }
 0x136   :  { %v281_v17 = vpop.f32.mrb[16].mxu0  ;;  %v361_v18 = vpop.f32.mrb[16].mxu1 }
 0x137   :  { %507 = vst [vmem:[%s1050_s2 + $0x40] sm:$0xff] %v281_v17  ;;  %523 = vst [vmem:[%s1050_s2 + $0xc0] sm:$0xff] %v361_v18  ;;  %v283_v19 = vpop.f32.mrb[17].mxu0  ;;  %v363_v20 = vpop.f32.mrb[17].mxu1 }
 0x13a   :  { %v286_v21 = vpop.f32.mrb[18].mxu0  ;;  %v366_v22 = vpop.f32.mrb[18].mxu1 }
 0x13b   :  { %508 = vst [vmem:[%s1050_s2 + $0x48] sm:$0xff] %v286_v21  ;;  %524 = vst [vmem:[%s1050_s2 + $0xc8] sm:$0xff] %v366_v22  ;;  %v288_v23 = vpop.f32.mrb[19].mxu0  ;;  %v368_v24 = vpop.f32.mrb[19].mxu1 }
 0x13e   :  { %v291_v25 = vpop.f32.mrb[20].mxu0  ;;  %v371_v26 = vpop.f32.mrb[20].mxu1 }
 0x13f   :  { %509 = vst [vmem:[%s1050_s2 + $0x50] sm:$0xff] %v291_v25  ;;  %525 = vst [vmem:[%s1050_s2 + $0xd0] sm:$0xff] %v371_v26  ;;  %v293_v27 = vpop.f32.mrb[21].mxu0  ;;  %v373_v28 = vpop.f32.mrb[21].mxu1 }
 0x142   :  { %v296_v29 = vpop.f32.mrb[22].mxu0  ;;  %v376_v30 = vpop.f32.mrb[22].mxu1 }
 0x143   :  { %510 = vst [vmem:[%s1050_s2 + $0x58] sm:$0xff] %v296_v29  ;;  %526 = vst [vmem:[%s1050_s2 + $0xd8] sm:$0xff] %v376_v30  ;;  %v298_v31 = vpop.f32.mrb[23].mxu0  ;;  %v378_v32 = vpop.f32.mrb[23].mxu1 }
 0x146   :  { %v301_v33 = vpop.f32.mrb[24].mxu0  ;;  %v381_v34 = vpop.f32.mrb[24].mxu1 }
 0x147   :  { %511 = vst [vmem:[%s1050_s2 + $0x60] sm:$0xff] %v301_v33  ;;  %527 = vst [vmem:[%s1050_s2 + $0xe0] sm:$0xff] %v381_v34  ;;  %v303_v35 = vpop.f32.mrb[25].mxu0  ;;  %v383_v36 = vpop.f32.mrb[25].mxu1 }
 0x14a   :  { %v306_v37 = vpop.f32.mrb[26].mxu0  ;;  %v386_v38 = vpop.f32.mrb[26].mxu1 }
 0x14b   :  { %512 = vst [vmem:[%s1050_s2 + $0x68] sm:$0xff] %v306_v37  ;;  %528 = vst [vmem:[%s1050_s2 + $0xe8] sm:$0xff] %v386_v38  ;;  %v308_v39 = vpop.f32.mrb[27].mxu0  ;;  %v388_v40 = vpop.f32.mrb[27].mxu1 }
 0x14e   :  { %v311_v41 = vpop.f32.mrb[28].mxu0  ;;  %v391_v42 = vpop.f32.mrb[28].mxu1 }
 0x14f   :  { %513 = vst [vmem:[%s1050_s2 + $0x70] sm:$0xff] %v311_v41  ;;  %529 = vst [vmem:[%s1050_s2 + $0xf0] sm:$0xff] %v391_v42  ;;  %v313_v43 = vpop.f32.mrb[29].mxu0  ;;  %v393_v44 = vpop.f32.mrb[29].mxu1 }
 0x152   :  { %v316_v45 = vpop.f32.mrb[30].mxu0  ;;  %v396_v46 = vpop.f32.mrb[30].mxu1 }
 0x153   :  { %514 = vst [vmem:[%s1050_s2 + $0x78] sm:$0xff] %v316_v45  ;;  %530 = vst [vmem:[%s1050_s2 + $0xf8] sm:$0xff] %v396_v46  ;;  %v318_v47 = vpop.f32.mrb[31].mxu0  ;;  %v398_v48 = vpop.f32.mrb[31].mxu1 }

</bundles_post_ra>
